<compile_context>
chip_gen: v7x
topology: tpu7x:2x2x1
jax: 0.10.0
libtpu: 0.0.40
codegen_flags: <defaults>
</compile_context>

<pallas_src>
import functools

import jax
import jax.numpy as jnp
from jax.experimental import pallas as pl
from jax.experimental.pallas import tpu as pltpu

_LANE = 128
_NEG_BIG = -1e30  # bias for padded action columns -> exp() underflows to 0


def _round_up(x, m):
    return ((x + m - 1) // m) * m


def _policy_kernel(a_real, x_ref, w1_ref, b1_ref, w2_ref, b2_ref, out_ref):
    """Fused MLP + softmax on one batch tile; weights resident in VMEM.

    x_ref: (TB, S) f32, w1_ref: (S, H1p) bf16, b1_ref: (1, H1p) f32,
    w2_ref: (H1p, Ap) bf16, b2_ref: (1, Ap) f32 (padded cols = -1e30),
    out_ref: (TB, a_real) f32.
    """
    # In-kernel f32 -> bf16 pack (cheap VPU op) so HBM carries f32 x only once.
    x = x_ref[...].astype(jnp.bfloat16)                                  # (TB, S)
    # fc1 (bf16 in, f32 accumulate) + ReLU in f32
    h = jnp.dot(x, w1_ref[...], preferred_element_type=jnp.float32) + b1_ref[...]
    h = jnp.maximum(h, 0.0)                                              # (TB, H1p) f32
    # fc2 (cast back to bf16 only for the MXU feed)
    logits = jnp.dot(h.astype(jnp.bfloat16), w2_ref[...],
                     preferred_element_type=jnp.float32) + b2_ref[...]   # (TB, Ap) f32
    # Numerically-stable softmax along the feature axis.  Padded columns carry
    # the -1e30 bias, so exp() gives them exactly 0 mass even though the
    # max / sum run over the full 128-lane vreg.
    m = jnp.max(logits, axis=-1, keepdims=True)
    e = jnp.exp(logits - m)
    denom = jnp.sum(e, axis=-1, keepdims=True)
    r = pl.reciprocal(denom, approx=True)       # EUP approx reciprocal
    r = r * (2.0 - denom * r)                   # one Newton step -> ~exact normalization
    # Store only the real action columns (masked vst, lane width a_real).
    out_ref[...] = (e[:, :a_real] * r).astype(out_ref.dtype)


def prepare_policy_params(w1, b1, w2, b2):
    """Pad feature dims to full 128-lane vregs and cast weights to bf16.

    Call ONCE (or under jit with the params as constants) — not per forward.
      w1: (state_size, fc1_units), b1: (fc1_units,)
      w2: (fc1_units, action_size), b2: (action_size,)
    """
    S, H1 = w1.shape
    A = w2.shape[1]
    H1p = _round_up(H1, _LANE)
    Ap = _round_up(A, _LANE)

    w1p = jnp.pad(w1, ((0, 0), (0, H1p - H1))).astype(jnp.bfloat16)         # (S, H1p)
    b1p = jnp.pad(b1.reshape(1, H1).astype(jnp.float32),
                  ((0, 0), (0, H1p - H1)))                                   # (1, H1p)
    w2p = jnp.pad(w2, ((0, H1p - H1), (0, Ap - A))).astype(jnp.bfloat16)     # (H1p, Ap)
    b2p = jnp.pad(b2.reshape(1, A).astype(jnp.float32),
                  ((0, 0), (0, Ap - A)), constant_values=_NEG_BIG)           # (1, Ap)
    return w1p, b1p, w2p, b2p


def _choose_batch_tile(B, tb_max):
    """Single block for small B; otherwise >=2 grid steps (v7x megacore)."""
    if B <= 256:
        return B, B
    TB = min(tb_max, _round_up(pl.cdiv(B, 2), 8))
    Bp = _round_up(B, TB)
    return TB, Bp


def policy_forward(x, params, *, tb_max=4096):
    """x: (B, state_size) f32; params from prepare_policy_params().
    Returns (B, action_size) softmax probabilities, f32."""
    w1p, b1p, w2p, b2p = params
    B, S = x.shape
    H1p = w1p.shape[1]
    Ap = w2p.shape[1]
    # Real action count: padded fc2-bias columns are -1e30, real ones are finite.
    A = int(w2p.shape[1]) - int(jnp.sum(b2p[0] <= _NEG_BIG / 2))

    TB, Bp = _choose_batch_tile(B, tb_max)
    xk = x if Bp == B else jnp.pad(x, ((0, Bp - B), (0, 0)))

    grid = (Bp // TB,)
    cost = pl.CostEstimate(
        flops=2 * Bp * (S * H1p + H1p * Ap),
        transcendentals=Bp * Ap,
        bytes_accessed=Bp * (4 * S + 4 * A) + 2 * (w1p.size + w2p.size)
                       + 4 * (b1p.size + b2p.size),
    )

    kernel = functools.partial(_policy_kernel, A)
    out = pl.pallas_call(
        kernel,
        out_shape=jax.ShapeDtypeStruct((Bp, A), jnp.float32),
        grid=grid,
        in_specs=[
            # activations: tiled over batch, f32 straight from HBM
            pl.BlockSpec((TB, S), lambda i: (i, 0)),
            # weights / biases: VMEM-resident, constant index -> single-buffered
            pl.BlockSpec((S, H1p), lambda i: (0, 0), pipeline_mode=pl.Buffered(1)),
            pl.BlockSpec((1, H1p), lambda i: (0, 0), pipeline_mode=pl.Buffered(1)),
            pl.BlockSpec((H1p, Ap), lambda i: (0, 0), pipeline_mode=pl.Buffered(1)),
            pl.BlockSpec((1, Ap), lambda i: (0, 0), pipeline_mode=pl.Buffered(1)),
        ],
        # Narrow output: A == full array dim, so (8,128) rule is satisfied.
        out_specs=pl.BlockSpec((TB, A), lambda i: (i, 0)),
        compiler_params=pltpu.CompilerParams(
            dimension_semantics=("parallel",)),  # v7x: shard tiles over 2 TCs
        cost_estimate=cost,
    )(xk, w1p, b1p, w2p, b2p)

    return out if Bp == B else out[:B]


def init_policy_params(key, state_size, action_size, fc1_units=64):
    """Mimic nn.Linear default init (uniform +/- 1/sqrt(fan_in)); weights
    returned already transposed to (in, out)."""
    k1, k2, k3, k4 = jax.random.split(key, 4)
    lim1 = 1.0 / jnp.sqrt(jnp.float32(state_size))
    lim2 = 1.0 / jnp.sqrt(jnp.float32(fc1_units))
    w1 = jax.random.uniform(k1, (state_size, fc1_units), jnp.float32, -lim1, lim1)
    b1 = jax.random.uniform(k2, (fc1_units,), jnp.float32, -lim1, lim1)
    w2 = jax.random.uniform(k3, (fc1_units, action_size), jnp.float32, -lim2, lim2)
    b2 = jax.random.uniform(k4, (action_size,), jnp.float32, -lim2, lim2)
    return w1, b1, w2, b2


def policy_forward_ref(x, w1, b1, w2, b2, *, mixed=True):
    """Pure-JAX reference.  mixed=True mirrors the kernel's bf16-MXU /
    f32-accumulate path; mixed=False is exact f32 PyTorch semantics."""
    if mixed:
        x = x.astype(jnp.bfloat16).astype(jnp.float32)
        w1 = w1.astype(jnp.bfloat16).astype(jnp.float32)
        w2 = w2.astype(jnp.bfloat16).astype(jnp.float32)
    h = jnp.maximum(x @ w1 + b1, 0.0)
    if mixed:
        h = h.astype(jnp.bfloat16).astype(jnp.float32)
    logits = h @ w2 + b2
    return jax.nn.softmax(logits, axis=1)


# TODO(synk): Policy.act() (Categorical sampling + log_prob) is host-side RL glue,
# not part of the forward pass, and is intentionally not ported to the kernel.

if __name__ == "__main__":
    key = jax.random.PRNGKey(0)
    k_params, k_x, k_x2 = jax.random.split(key, 3)

    batch = 2
    state_size = 8
    action_size = 4
    fc1_units = 64

    w1, b1, w2, b2 = init_policy_params(k_params, state_size, action_size, fc1_units)
    params = prepare_policy_params(w1, b1, w2, b2)   # pad/cast once, not per call

    # --- small-batch path (single block) ---
    x = jax.random.normal(k_x, (batch, state_size), jnp.float32)
    probs = jax.block_until_ready(policy_forward(x, params))
    assert probs.shape == (batch, action_size)
    assert jnp.allclose(jnp.sum(probs, axis=1), 1.0, atol=1e-4)
    ref_mixed = policy_forward_ref(x, w1, b1, w2, b2, mixed=True)
    assert jnp.allclose(probs, ref_mixed, atol=3e-3, rtol=3e-3)
    ref_full = policy_forward_ref(x, w1, b1, w2, b2, mixed=False)
    assert jnp.allclose(probs, ref_full, atol=5e-2, rtol=5e-2)

    # --- larger batch exercising the 2-step grid + row padding ---
    batch2 = 270
    x2 = jax.random.normal(k_x2, (batch2, state_size), jnp.float32)
    probs2 = jax.block_until_ready(policy_forward(x2, params))
    assert probs2.shape == (batch2, action_size)
    assert jnp.allclose(jnp.sum(probs2, axis=1), 1.0, atol=1e-4)
    ref2 = policy_forward_ref(x2, w1, b1, w2, b2, mixed=True)
    assert jnp.allclose(probs2, ref2, atol=3e-3, rtol=3e-3)

    print("KERNEL_OK")
</pallas_src>

<mosaic_0001>
module attributes {stable_mosaic.version = 11 : i64} {
  func.func @_policy_kernel(%arg0: i32, %arg1: memref<2x8xf32, #tpu.memory_space<vmem>>, %arg2: memref<8x128xbf16, #tpu.memory_space<vmem>>, %arg3: memref<1x128xf32, #tpu.memory_space<vmem>>, %arg4: memref<128x128xbf16, #tpu.memory_space<vmem>>, %arg5: memref<1x128xf32, #tpu.memory_space<vmem>>, %arg6: memref<2x4xf32, #tpu.memory_space<vmem>>) attributes {dimension_semantics = [#tpu.dimension_semantics<parallel>], iteration_bounds = array<i64: 1>, scalar_prefetch = 0 : i64, scratch_operands = 0 : i64, tpu.core_type = #tpu.core_type<tc>, window_params = [{transform_indices = @transform_0, window_bounds = array<i64: 2, 8>}, {pipeline_mode = #tpu.pipeline_mode<synchronous>, transform_indices = @transform_1, window_bounds = array<i64: 8, 128>}, {pipeline_mode = #tpu.pipeline_mode<synchronous>, transform_indices = @transform_2, window_bounds = array<i64: 1, 128>}, {pipeline_mode = #tpu.pipeline_mode<synchronous>, transform_indices = @transform_3, window_bounds = array<i64: 128, 128>}, {pipeline_mode = #tpu.pipeline_mode<synchronous>, transform_indices = @transform_4, window_bounds = array<i64: 1, 128>}, {transform_indices = @transform_5, window_bounds = array<i64: 2, 4>}]} {
    %c0 = arith.constant 0 : index
    %c0_0 = arith.constant 0 : index
    %0 = vector.load %arg1[%c0, %c0_0] : memref<2x8xf32, #tpu.memory_space<vmem>>, vector<2x8xf32>
    %1 = arith.truncf %0 : vector<2x8xf32> to vector<2x8xbf16>
    %c0_1 = arith.constant 0 : index
    %c0_2 = arith.constant 0 : index
    %2 = vector.load %arg2[%c0_1, %c0_2] : memref<8x128xbf16, #tpu.memory_space<vmem>>, vector<8x128xbf16>
    %cst = arith.constant dense<0.000000e+00> : vector<2x128xf32>
    %3 = tpu.matmul %1, %2, %cst {dimension_numbers = #tpu.dot_dimension_numbers<[1], [0], [0], [1], [0, 0, 1, 1], [], []>} : vector<2x8xbf16>, vector<8x128xbf16>, vector<2x128xf32> -> vector<2x128xf32>
    %c0_3 = arith.constant 0 : index
    %c0_4 = arith.constant 0 : index
    %4 = vector.load %arg3[%c0_3, %c0_4] : memref<1x128xf32, #tpu.memory_space<vmem>>, vector<1x128xf32>
    %5 = vector.broadcast %4 : vector<1x128xf32> to vector<2x128xf32>
    %6 = arith.addf %3, %5 : vector<2x128xf32>
    %cst_5 = arith.constant 0.000000e+00 : f32
    %7 = vector.broadcast %cst_5 : f32 to vector<2x128xf32>
    %8 = arith.maximumf %6, %7 : vector<2x128xf32>
    %9 = arith.truncf %8 : vector<2x128xf32> to vector<2x128xbf16>
    %c0_6 = arith.constant 0 : index
    %c0_7 = arith.constant 0 : index
    %10 = vector.load %arg4[%c0_6, %c0_7] : memref<128x128xbf16, #tpu.memory_space<vmem>>, vector<128x128xbf16>
    %cst_8 = arith.constant dense<0.000000e+00> : vector<2x128xf32>
    %11 = tpu.matmul %9, %10, %cst_8 {dimension_numbers = #tpu.dot_dimension_numbers<[1], [0], [0], [1], [0, 0, 1, 1], [], []>} : vector<2x128xbf16>, vector<128x128xbf16>, vector<2x128xf32> -> vector<2x128xf32>
    %c0_9 = arith.constant 0 : index
    %c0_10 = arith.constant 0 : index
    %12 = vector.load %arg5[%c0_9, %c0_10] : memref<1x128xf32, #tpu.memory_space<vmem>>, vector<1x128xf32>
    %13 = vector.broadcast %12 : vector<1x128xf32> to vector<2x128xf32>
    %14 = arith.addf %11, %13 : vector<2x128xf32>
    %cst_11 = arith.constant dense<0xFF800000> : vector<2xf32>
    %15 = vector.multi_reduction <maximumf>, %14, %cst_11 [1] : vector<2x128xf32> to vector<2xf32>
    %16 = vector.shape_cast %15 : vector<2xf32> to vector<2x1xf32>
    %17 = vector.broadcast %16 : vector<2x1xf32> to vector<2x128xf32>
    %18 = arith.subf %14, %17 : vector<2x128xf32>
    %19 = math.exp %18 : vector<2x128xf32>
    %cst_12 = arith.constant dense<0.000000e+00> : vector<2xf32>
    %20 = vector.multi_reduction <add>, %19, %cst_12 [1] : vector<2x128xf32> to vector<2xf32>
    %21 = vector.shape_cast %20 : vector<2xf32> to vector<2x1xf32>
    %22 = tpu.reciprocal %21 {approx = true} : vector<2x1xf32> -> vector<2x1xf32>
    %23 = arith.mulf %21, %22 : vector<2x1xf32>
    %cst_13 = arith.constant 2.000000e+00 : f32
    %24 = vector.broadcast %cst_13 : f32 to vector<2x1xf32>
    %25 = arith.subf %24, %23 : vector<2x1xf32>
    %26 = arith.mulf %22, %25 : vector<2x1xf32>
    %27 = vector.extract_strided_slice %19 {offsets = [0, 0], sizes = [2, 4], strides = [1, 1]} : vector<2x128xf32> to vector<2x4xf32>
    %28 = vector.broadcast %26 : vector<2x1xf32> to vector<2x4xf32>
    %29 = arith.mulf %27, %28 : vector<2x4xf32>
    %c0_14 = arith.constant 0 : index
    %c0_15 = arith.constant 0 : index
    %30 = vector.load %arg6[%c0_14, %c0_15] : memref<2x4xf32, #tpu.memory_space<vmem>>, vector<2x4xf32>
    tpu.vector_store %arg6[%c0_14, %c0_15], %29 {strides = array<i32>} : memref<2x4xf32, #tpu.memory_space<vmem>>, vector<2x4xf32>,
    return
  }
  func.func @transform_0(%arg0: i32) -> (i32, i32) {
    %c0_i32 = arith.constant 0 : i32
    %c0_i32_0 = arith.constant 0 : i32
    return %arg0, %c0_i32 : i32, i32
  }
  func.func @transform_1(%arg0: i32) -> (i32, i32) {
    %c0_i32 = arith.constant 0 : i32
    %c0_i32_0 = arith.constant 0 : i32
    %c0_i32_1 = arith.constant 0 : i32
    return %c0_i32, %c0_i32_0 : i32, i32
  }
  func.func @transform_2(%arg0: i32) -> (i32, i32) {
    %c0_i32 = arith.constant 0 : i32
    %c0_i32_0 = arith.constant 0 : i32
    %c0_i32_1 = arith.constant 0 : i32
    return %c0_i32, %c0_i32_0 : i32, i32
  }
  func.func @transform_3(%arg0: i32) -> (i32, i32) {
    %c0_i32 = arith.constant 0 : i32
    %c0_i32_0 = arith.constant 0 : i32
    %c0_i32_1 = arith.constant 0 : i32
    return %c0_i32, %c0_i32_0 : i32, i32
  }
  func.func @transform_4(%arg0: i32) -> (i32, i32) {
    %c0_i32 = arith.constant 0 : i32
    %c0_i32_0 = arith.constant 0 : i32
    %c0_i32_1 = arith.constant 0 : i32
    return %c0_i32, %c0_i32_0 : i32, i32
  }
  func.func @transform_5(%arg0: i32) -> (i32, i32) {
    %c0_i32 = arith.constant 0 : i32
    %c0_i32_0 = arith.constant 0 : i32
    return %arg0, %c0_i32 : i32, i32
  }
}

</mosaic_0001>

<bundles_post_ra>
// kernel: tpu_custom_call.1
= control target key start
LH: loop header
LB: loop body
LE: loop exit
PB: predicated region body
PF: predicated region fallthrough
CT: control target
= control target key end

     0   :  { %10 = vsyncpa [#allocation3], 0  ;;  %s517_s0 = inlined_call_operand.hbm [shape: f32[2,8], index: 0, kind: input, shape index: {}]   ;;  %s518_s1 = inlined_call_operand.hbm [shape: bf16[8,128], index: 1, kind: input, shape index: {}]   ;;  %s519_s2 = inlined_call_operand.vmem [shape: f32[1,128], index: 2, kind: input, shape index: {}]   ;;  %s520_s3 = inlined_call_operand.hbm [shape: bf16[128,128], index: 3, kind: input, shape index: {}]   ;;  %s521_s4 = inlined_call_operand.vmem [shape: f32[1,128], index: 4, kind: input, shape index: {}]   ;;  %s522_s5 = inlined_call_operand.hbm [shape: f32[2,4], index: 5, kind: output, shape index: {}]  }
   0x1   :  { %11 = vsyncpa [#allocation6], 0 }
   0x2   :  { %12 = vsyncpa [#allocation4], 0  ;;  %s425_s18 = smov [#allocation5]   ;;  %s426_s20 = smov [#allocation2]  }
   0x3   :  { %s29_s19 = sshll.u32 %s425_s18, 4  ;;  %s19_s21 = sshll.u32 %s426_s20, 4  ;;  %s30_s19 = int_to_ptr.vmem [resolvable:$true] %s29_s19  ;;  %s20_s21 = int_to_ptr.vmem [resolvable:$true] %s19_s21 }
   0x4   :  { %s331_s24 = scalar_lea.hbm %s518_s1, 64 }
   0x5   :  { %p332_p0 = scmp.ne.s32.totalorder %s518_s1, %s331_s24  ;;  %p335_p1 = scmp.lt.u32.totalorder %s331_s24, %s518_s1 }
   0x7   :  { %p337_p2 = pnand %p335_p1, %p332_p0 }
   0x9   :  { %340 = shalt.err (!%p337_p2)
}
   0xa   :  { %s341_s29 = scalar_lea.vmem %s30_s19, 64  ;;  %p346_p4 = scmp.lt.s32.totalorder %s30_s19, %s30_s19 }
   0xb   :  { %p342_p3 = scmp.ne.s32.totalorder %s30_s19, %s341_s29  ;;  %p347_p5 = scmp.lt.s32.totalorder %s341_s29, %s341_s29 }
   0xd   :  { %p348_p6 = por %p347_p5, %p346_p4 }
   0xf   :  { %p349_p7 = pnand %p348_p6, %p342_p3 }
  0x11   :  { %352 = shalt.err (!%p349_p7)
}
  0x12   :  { %32 = dma.hbm_to_vmem [thread:$0]  %s518_s1, 64, %s30_s19, [#allocation6]  }
  0x13   :  { %s353_s9 = scalar_lea.hbm %s517_s0, 32 }
  0x14   :  { %p354_p8 = scmp.ne.s32.totalorder %s517_s0, %s353_s9  ;;  %p357_p9 = scmp.lt.u32.totalorder %s353_s9, %s517_s0 }
  0x16   :  { %p359_p10 = pnand %p357_p9, %p354_p8 }
  0x18   :  { %362 = shalt.err (!%p359_p10)
}
  0x19   :  { %s363_s14 = scalar_lea.vmem %s20_s21, 32  ;;  %p368_p12 = scmp.lt.s32.totalorder %s20_s21, %s20_s21 }
  0x1a   :  { %p364_p11 = scmp.ne.s32.totalorder %s20_s21, %s363_s14  ;;  %p369_p13 = scmp.lt.s32.totalorder %s363_s14, %s363_s14 }
  0x1c   :  { %p370_p0 = por %p369_p13, %p368_p12 }
  0x1e   :  { %p371_p1 = pnand %p370_p0, %p364_p11 }
  0x20   :  { %374 = shalt.err (!%p371_p1)
}
  0x21   :  { %22 = dma.hbm_to_vmem [thread:$0]  %s517_s0, 32, %s20_s21, [#allocation3]  }
  0x22   :  { %s427_s16 = smov [#allocation7]   ;;  %s375_s20 = scalar_lea.hbm %s520_s3, 1024 }
  0x23   :  { %s40_s17 = sshll.u32 %s427_s16, 4  ;;  %p376_p2 = scmp.ne.s32.totalorder %s520_s3, %s375_s20  ;;  %s41_s17 = int_to_ptr.vmem [resolvable:$true] %s40_s17 }
  0x24   :  { %p379_p3 = scmp.lt.u32.totalorder %s375_s20, %s520_s3 }
  0x26   :  { %p381_p4 = pnand %p379_p3, %p376_p2 }
  0x28   :  { %384 = shalt.err (!%p381_p4)
}
  0x29   :  { %s385_s26 = scalar_lea.vmem %s41_s17, 1024  ;;  %p390_p6 = scmp.lt.s32.totalorder %s41_s17, %s41_s17 }
  0x2a   :  { %p386_p5 = scmp.ne.s32.totalorder %s41_s17, %s385_s26  ;;  %p391_p7 = scmp.lt.s32.totalorder %s385_s26, %s385_s26 }
  0x2c   :  { %p392_p8 = por %p391_p7, %p390_p6 }
  0x2e   :  { %p393_p9 = pnand %p392_p8, %p386_p5 }
  0x30   :  { %396 = shalt.err (!%p393_p9)
}
  0x31   :  { %s428_s0 = smov 64   ;;  %s429_s21 = smov 4  }
  0x32   :  { %46 = dma.hbm_to_vmem [thread:$0]  %s520_s3, 1024, %s41_s17, [#allocation6], %s428_s0, %s428_s0, %s429_s21  }
  0x33   :  { %419 = dma.done.wait [#allocation3], 32  }
  0x34   :  { %420 = vsyncadd [#allocation3], 4294967264 }
  0x35   :  { %421 = dma.done.wait [#allocation6], 1088  }
  0x36   :  { %422 = vsyncadd [#allocation6], 4294966208  ;;  %v430_v0 = vmov 0.0   ;;  %vm431_vm0 = vmmov 0   ;;  %vm73_vm1 = vcmask 1043456   ;;  %v319_v5 = vld [vmem:[#allocation7] sm:$0xff]  }
  0x37   :  { %285 = vmatprep.subr.bf16.mxu0 %v430_v0  ;;  %287 = vmatprep.mubr.msk.bf16.mxu0 %vm431_vm0, %v430_v0  ;;  %v61_v1 = vld [vmem:[#allocation5] sm:$0xf]  ;;  %v59_v2 = vld [vmem:[#allocation2] sm:$0x3]  ;;  %vm69_vm2 = vcmask 64512   ;;  %v320_v6 = vld [vmem:[#allocation7 + $0x8] sm:$0xff]  }
  0x38   :  { %291 = vmatprep.subr.bf16.mxu1 %v430_v0  ;;  %307 = vmatprep.mubr.msk.bf16.mxu1 %vm431_vm0, %v430_v0  ;;  %v75_v3 = vsel %vm73_vm1, %v61_v1, 0  ;;  %v60_v4 = vpack.c.bf16 %v59_v2, %v59_v2  ;;  %v321_v7 = vld [vmem:[#allocation7 + $0x10] sm:$0xff]   ;;  %v322_v8 = vld [vmem:[#allocation7 + $0x18] sm:$0xff]   ;;  %v323_v9 = vld [vmem:[#allocation7 + $0x20] sm:$0xff]   ;;  %vm230_vm3 = vcmask 1041408   ;;  %vm245_vm4 = vcmask 25600  }
  0x39   :  { %286 = vmatpush3.bf16.msra.mxu0 %v75_v3  ;;  %292 = vmatpush3.bf16.msra.mxu1 %v319_v5  ;;  %v324_v10 = vld [vmem:[#allocation7 + $0x28] sm:$0xff]   ;;  %v325_v11 = vld [vmem:[#allocation7 + $0x30] sm:$0xff]   ;;  %v326_v12 = vld [vmem:[#allocation7 + $0x38] sm:$0xff]  }
  0x3a   :  { %293 = vmatprep.subr.bf16.mxu1 %v430_v0  ;;  %v263_v13 = vld [vmem:[%s519_s2] ss:$0 sm:$0xff]  ;;  %s432_s2 = smov [#allocation8]  }
  0x3b   :  { %v265_v21 = vld [vmem:[%s521_s4] ss:$0 sm:$0xff]  ;;  %s253_s4 = sshll.u32 %s432_s2, 4  ;;  %s254_s4 = int_to_ptr.vmem [resolvable:$true] %s253_s4 }
  0x3c   :  { %288 = vmatmul.mubr.msk.bf16.vlgmr.msra.gmra.mrb[0].mxu0 %vm69_vm2, %v60_v4  ;;  %s397_s7 = scalar_lea.vmem %s254_s4, 32  ;;  %p402_p11 = scmp.lt.s32.totalorder %s254_s4, %s254_s4 }
  0x3d   :  { %294 = vmatpush3.bf16.msra.mxu1 %v320_v6  ;;  %p398_p10 = scmp.ne.s32.totalorder %s254_s4, %s397_s7  ;;  %p403_p12 = scmp.lt.s32.totalorder %s397_s7, %s397_s7 }
  0x3e   :  { %295 = vmatprep.subr.bf16.mxu1 %v430_v0 }
  0x3f   :  { %p404_p13 = por %p403_p12, %p402_p11 }
  0x41   :  { %296 = vmatpush3.bf16.msra.mxu1 %v321_v7  ;;  %p405_p0 = pnand %p404_p13, %p398_p10 }
  0x42   :  { %297 = vmatprep.subr.bf16.mxu1 %v430_v0 }
  0x45   :  { %298 = vmatpush3.bf16.msra.mxu1 %v322_v8 }
  0x46   :  { %299 = vmatprep.subr.bf16.mxu1 %v430_v0 }
  0x49   :  { %300 = vmatpush3.bf16.msra.mxu1 %v323_v9 }
  0x4a   :  { %301 = vmatprep.subr.bf16.mxu1 %v430_v0 }
  0x4d   :  { %302 = vmatpush3.bf16.msra.mxu1 %v324_v10 }
  0x4e   :  { %303 = vmatprep.subr.bf16.mxu1 %v430_v0 }
  0x51   :  { %304 = vmatpush3.bf16.msra.mxu1 %v325_v11 }
  0x52   :  { %305 = vmatprep.subr.bf16.mxu1 %v430_v0 }
  0x55   :  { %306 = vmatpush3.bf16.msra.mxu1 %v326_v12 }
 0x10f   :  { %v111_v14 = vpop.f32.mrb[0].mxu0 }
 0x110   :  { %v112_v15 = vadd.f32 %v263_v13, %v111_v14  ;;  %v289_v16 = vpop.f32.mrb[1].mxu0 }
 0x111   :  { %v114_v17 = vpop.f32.mrb[2].mxu0 }
 0x112   :  { %v117_v18 = vmax.f32 %v112_v15, 0.0  ;;  %v290_v19 = vpop.f32.mrb[3].mxu0 }
 0x114   :  { %v118_v20 = vpack.c.bf16 %v117_v18, %v117_v18 }
 0x116   :  { %308 = vmatmul.mubr.bf16.vlgmr.msra.gmra.mrb[0].mxu1 %v118_v20 }
 0x1e9   :  { %v224_v22 = vpop.f32.mrb[0].mxu1 }
 0x1ea   :  { %v225_v23 = vadd.f32 %v265_v21, %v224_v22  ;;  %v309_v24 = vpop.f32.mrb[1].mxu1 }
 0x1eb   :  { %v227_v25 = vpop.f32.mrb[2].mxu1 }
 0x1ec   :  { %v310_v26 = vpop.f32.mrb[3].mxu1  ;;  %v231_v27 = vsel %vm230_vm3, %v225_v23, -inf }
 0x1ed   :  { %232 = vmax.xlane.f32.xlu0 %v231_v27 }
 0x27a   :  { %v233_v28 = vpop.xlane.xlu0 %232 }
 0x27b   :  { %v234_v29 = vsub.f32 %v225_v23, %v233_v28 }
 0x27d   :  { %v235_v30 = vmul.f32 1.442695, %v234_v29 }
 0x27f   :  { %327 = vpow2.f32 %v235_v30 }
 0x289   :  { %v328_v31 = vpop.eup %327 }
 0x28a   :  { %v237_v32 = vsel %vm230_vm3, %v328_v31, 0.0 }
 0x28b   :  { %238 = vadd.xlane.f32.xlu0 %v237_v32 }
 0x318   :  { %v239_v33 = vpop.xlane.xlu0 %238 }
 0x319   :  { %329 = vrcp.f32 %v239_v33 }
 0x323   :  { %v330_v34 = vpop.eup %329 }
 0x324   :  { %v241_v35 = vmul.f32 %v330_v34, %v239_v33 }
 0x326   :  { %v242_v36 = vsub.f32 2.0, %v241_v35 }
 0x328   :  { %v243_v37 = vmul.f32 %v330_v34, %v242_v36 }
 0x32a   :  { %v244_v38 = vmul.f32 %v328_v31, %v243_v37 }
 0x32c   :  { %246 = vst.msk [vmem:[#allocation8] sm:$0x3] %vm245_vm4, %v244_v38 }
 0x32d   :  { %408 = shalt.err (!%p405_p0)
}
 0x32e   :  { %s409_s10 = scalar_lea.hbm %s522_s5, 32 }
 0x32f   :  { %p410_p1 = scmp.ne.s32.totalorder %s522_s5, %s409_s10  ;;  %p413_p2 = scmp.lt.u32.totalorder %s409_s10, %s522_s5 }
 0x331   :  { %p415_p3 = pnand %p413_p2, %p410_p1 }
 0x333   :  { %418 = shalt.err (!%p415_p3)
}
 0x334   :  { %256 = dma.vmem_to_hbm [thread:$0]  %s254_s4, 32, %s522_s5, [#allocation4]  }
 0x335   :  { %423 = dma.done.wait [#allocation4], 32  }
 0x336   :  { %424 = vsyncadd [#allocation4], 4294967264 }
 0x337   :  { %260 = vsyncpa [#allocation3], 1 }
 0x338   :  { %261 = vsyncpa [#allocation6], 1 }
 0x339   :  { %262 = vsyncpa [#allocation4], 1 }

</bundles_post_ra>
